<compile_context>
chip_gen: v5e
topology: v5e:2x2
jax: 0.10.0
libtpu: 0.0.40
codegen_flags: <defaults>
</compile_context>

<pallas_src>
import functools

import jax
import jax.numpy as jnp
from jax.experimental import pallas as pl
from jax.experimental.pallas import tpu as pltpu


def _round_up(x, m):
    return ((x + m - 1) // m) * m


def _linear_kernel(x_ref, w_ref, b_ref, o_ref, acc_ref):
    # x_ref: (tm, tk) bf16   w_ref: (tk, tn) bf16 (weight pre-transposed once)
    # b_ref: (1, tn)  f32    o_ref: (tm, tn)      acc_ref: (tm, tn) f32
    k = pl.program_id(2)

    @pl.when(k == 0)
    def _():
        acc_ref[...] = jnp.zeros_like(acc_ref)

    # Standard contraction (K is dim 1 of x and dim 0 of w) -> the MXU consumes
    # both operands directly; no per-tile transpose on the weight feed path.
    acc_ref[...] += jnp.dot(x_ref[...], w_ref[...],
                            preferred_element_type=jnp.float32)

    @pl.when(k == pl.num_programs(2) - 1)
    def _():
        o_ref[...] = (acc_ref[...] + b_ref[...]).astype(o_ref.dtype)


@functools.partial(jax.jit,
                   static_argnames=("out_features", "tm_cap", "tn", "tk"))
def _linear_forward_fmt(x, w_fmt, b_fmt, *, out_features, tm_cap, tn, tk):
    """x: (B, ...); w_fmt: (Fp, Op) bf16, pre-padded/transposed; b_fmt: (1, Op) f32."""
    B = x.shape[0]
    Fp, Op = w_fmt.shape
    out_dtype = x.dtype

    # nn.Flatten(start_dim=1) + bf16 cast of the activations.
    x2 = x.reshape(B, -1).astype(jnp.bfloat16)
    F = x2.shape[1]

    # M tiling: multiple of 16 (bf16 packs 2 rows per sublane), re-balanced so
    # the padded batch Bp over-pads as little as possible.
    tm = min(tm_cap, _round_up(B, 16))
    n_m = pl.cdiv(B, tm)
    tm = _round_up(pl.cdiv(B, n_m), 16)
    Bp = n_m * tm

    # v7x megacore: ensure >= 2 (i, j) tiles when possible so neither of the
    # two TensorCores idles at small batch.  (tn | Op is preserved.)
    if Bp // tm == 1 and Op // tn == 1 and tn > 128:
        tn = 128 if (tn // 128) % 2 else tn // 2

    if (Bp, Fp) != (B, F):
        x_p = jnp.pad(x2, ((0, Bp - B), (0, Fp - F)))   # zeros are K-neutral
    else:
        x_p = x2

    grid = (Bp // tm, Op // tn, Fp // tk)

    # VMEM budget (double-buffered inputs/outputs + f32 acc scratch), with
    # headroom, kept below v7x's 64 MiB/TC physical VMEM.
    out_itemsize = jnp.dtype(out_dtype).itemsize
    est_vmem = (2 * tm * tk * 2          # x tile (bf16), double buffered
                + 2 * tk * tn * 2        # w tile (bf16), double buffered
                + 2 * 1 * tn * 4         # bias tile
                + 2 * tm * tn * out_itemsize   # out tile, double buffered
                + tm * tn * 4)           # f32 accumulator scratch
    vmem_limit = max(int(1.75 * est_vmem) + (4 << 20), 16 << 20)
    vmem_limit = min(vmem_limit, 56 << 20)

    cost = pl.CostEstimate(
        flops=2 * Bp * Op * Fp,
        transcendentals=0,
        bytes_accessed=(x_p.size * 2 + w_fmt.size * 2 + b_fmt.size * 4
                        + Bp * Op * out_itemsize),
    )

    out = pl.pallas_call(
        _linear_kernel,
        out_shape=jax.ShapeDtypeStruct((Bp, Op), out_dtype),
        grid_spec=pltpu.PrefetchScalarGridSpec(
            num_scalar_prefetch=0,
            grid=grid,
            in_specs=[
                pl.BlockSpec((tm, tk), lambda i, j, k: (i, k)),   # activations
                pl.BlockSpec((tk, tn), lambda i, j, k: (k, j)),   # weight (F, O)
                pl.BlockSpec((1, tn), lambda i, j, k: (0, j)),    # bias
            ],
            out_specs=pl.BlockSpec((tm, tn), lambda i, j, k: (i, j)),
            scratch_shapes=[pltpu.VMEM((tm, tn), jnp.float32)],
        ),
        compiler_params=pltpu.CompilerParams(
            dimension_semantics=("parallel", "parallel", "arbitrary"),
            vmem_limit_bytes=vmem_limit,
        ),
        cost_estimate=cost,
    )(x_p, w_fmt, b_fmt)

    if (Bp, Op) != (B, out_features):
        out = out[:B, :out_features]
    return out[:, :, None]                 # .unsqueeze(dim=2) -> (B, O, 1)


def make_linear(weight, bias, *, tm=512, tn=512, tk=2048):
    """One-time (off the hot path) formatting of the static nn.Linear params.

    Pads O/F up to lane-aligned tile multiples, transposes to (F, O), casts the
    weight to bf16, and returns a jitted forward(x) -> (B, O, 1).
    """
    O, F = weight.shape

    # Balanced, lane-aligned N / K tiles (multiples of 128; defaults are
    # multiples of 256 to fill the 2x256 MXU on v6e/v7x).
    tn = min(tn, _round_up(O, 128))
    n_n = pl.cdiv(O, tn)
    tn = _round_up(pl.cdiv(O, n_n), 128)
    Op = n_n * tn

    tk = min(tk, _round_up(F, 128))
    n_k = pl.cdiv(F, tk)
    tk = _round_up(pl.cdiv(F, n_k), 128)
    Fp = n_k * tk

    # One-time weight/bias formatting — no per-call HBM pad/transpose.
    w_fmt = jnp.pad(weight, ((0, Op - O), (0, Fp - F))).T.astype(jnp.bfloat16)
    b_fmt = jnp.pad(bias.astype(jnp.float32), (0, Op - O)).reshape(1, Op)

    def forward(x):
        return _linear_forward_fmt(x, w_fmt, b_fmt, out_features=O,
                                   tm_cap=tm, tn=tn, tk=tk)

    return forward


if __name__ == "__main__":
    key = jax.random.PRNGKey(0)
    k_x, k_w, k_b = jax.random.split(key, 3)

    # Small shapes consistent with the module: x (B, C, H, W) flattened to F.
    B, C, H, W = 2, 4, 16, 16
    in_features = C * H * W                    # 1024
    out_features = 32

    x = jax.random.normal(k_x, (B, C, H, W), dtype=jnp.float32)

    # Deterministic nn.Linear-style init: U(-1/sqrt(F), 1/sqrt(F)).
    bound = 1.0 / (in_features ** 0.5)
    weight = jax.random.uniform(
        k_w, (out_features, in_features), jnp.float32, -bound, bound)
    bias = jax.random.uniform(
        k_b, (out_features,), jnp.float32, -bound, bound)

    forward = make_linear(weight, bias)
    y = forward(x)
    jax.block_until_ready(y)

    # Reference with matching operand precision (bf16 inputs, f32 accumulate).
    x2 = x.reshape(B, -1)
    y_ref = (jnp.dot(x2.astype(jnp.bfloat16), weight.T.astype(jnp.bfloat16),
                     preferred_element_type=jnp.float32) + bias)[:, :, None]
    assert y.shape == (B, out_features, 1)
    assert jnp.allclose(y, y_ref.astype(y.dtype), atol=1e-2, rtol=1e-2)

    print("KERNEL_OK")
</pallas_src>

<mosaic_0001>
module attributes {stable_mosaic.version = 11 : i64} {
  func.func @_linear_kernel(%arg0: i32, %arg1: i32, %arg2: i32, %arg3: memref<16x1024xbf16, #tpu.memory_space<vmem>>, %arg4: memref<1024x128xbf16, #tpu.memory_space<vmem>>, %arg5: memref<1x128xf32, #tpu.memory_space<vmem>>, %arg6: memref<16x128xf32, #tpu.memory_space<vmem>>, %arg7: memref<16x128xf32, #tpu.memory_space<vmem>>) attributes {dimension_semantics = [#tpu.dimension_semantics<parallel>, #tpu.dimension_semantics<parallel>, #tpu.dimension_semantics<arbitrary>], iteration_bounds = array<i64: 1, 1, 1>, scalar_prefetch = 0 : i64, scratch_operands = 1 : i64, tpu.core_type = #tpu.core_type<tc>, window_params = [{transform_indices = @transform_0, window_bounds = array<i64: 16, 1024>}, {transform_indices = @transform_1, window_bounds = array<i64: 1024, 128>}, {transform_indices = @transform_2, window_bounds = array<i64: 1, 128>}, {transform_indices = @transform_3, window_bounds = array<i64: 16, 128>}]} {
    %c0_i32 = arith.constant 0 : i32
    %0 = arith.cmpi eq, %arg2, %c0_i32 : i32
    %1 = arith.extui %0 : i1 to i32
    %c0_i32_0 = arith.constant 0 : i32
    %2 = arith.cmpi ne, %1, %c0_i32_0 : i32
    scf.if %2 {
      %cst_10 = arith.constant 0.000000e+00 : f32
      %12 = vector.broadcast %cst_10 : f32 to vector<16x128xf32>
      %c0_11 = arith.constant 0 : index
      %c0_12 = arith.constant 0 : index
      %13 = vector.load %arg7[%c0_11, %c0_12] : memref<16x128xf32, #tpu.memory_space<vmem>>, vector<16x128xf32>
      tpu.vector_store %arg7[%c0_11, %c0_12], %12 {strides = array<i32>} : memref<16x128xf32, #tpu.memory_space<vmem>>, vector<16x128xf32>,
    } else {
    }
    %c0 = arith.constant 0 : index
    %c0_1 = arith.constant 0 : index
    %3 = vector.load %arg7[%c0, %c0_1] : memref<16x128xf32, #tpu.memory_space<vmem>>, vector<16x128xf32>
    %c0_2 = arith.constant 0 : index
    %c0_3 = arith.constant 0 : index
    %4 = vector.load %arg3[%c0_2, %c0_3] : memref<16x1024xbf16, #tpu.memory_space<vmem>>, vector<16x1024xbf16>
    %c0_4 = arith.constant 0 : index
    %c0_5 = arith.constant 0 : index
    %5 = vector.load %arg4[%c0_4, %c0_5] : memref<1024x128xbf16, #tpu.memory_space<vmem>>, vector<1024x128xbf16>
    %cst = arith.constant dense<0.000000e+00> : vector<16x128xf32>
    %6 = tpu.matmul %4, %5, %cst {dimension_numbers = #tpu.dot_dimension_numbers<[1], [0], [0], [1], [0, 0, 1, 1], [], []>} : vector<16x1024xbf16>, vector<1024x128xbf16>, vector<16x128xf32> -> vector<16x128xf32>
    %7 = arith.addf %3, %6 : vector<16x128xf32>
    %c0_6 = arith.constant 0 : index
    %c0_7 = arith.constant 0 : index
    %8 = vector.load %arg7[%c0_6, %c0_7] : memref<16x128xf32, #tpu.memory_space<vmem>>, vector<16x128xf32>
    tpu.vector_store %arg7[%c0_6, %c0_7], %7 {strides = array<i32>} : memref<16x128xf32, #tpu.memory_space<vmem>>, vector<16x128xf32>,
    %c0_i32_8 = arith.constant 0 : i32
    %9 = arith.cmpi eq, %arg2, %c0_i32_8 : i32
    %10 = arith.extui %9 : i1 to i32
    %c0_i32_9 = arith.constant 0 : i32
    %11 = arith.cmpi ne, %10, %c0_i32_9 : i32
    scf.if %11 {
      %c0_10 = arith.constant 0 : index
      %c0_11 = arith.constant 0 : index
      %12 = vector.load %arg7[%c0_10, %c0_11] : memref<16x128xf32, #tpu.memory_space<vmem>>, vector<16x128xf32>
      %c0_12 = arith.constant 0 : index
      %c0_13 = arith.constant 0 : index
      %13 = vector.load %arg5[%c0_12, %c0_13] : memref<1x128xf32, #tpu.memory_space<vmem>>, vector<1x128xf32>
      %14 = vector.broadcast %13 : vector<1x128xf32> to vector<16x128xf32>
      %15 = arith.addf %12, %14 : vector<16x128xf32>
      %c0_14 = arith.constant 0 : index
      %c0_15 = arith.constant 0 : index
      %16 = vector.load %arg6[%c0_14, %c0_15] : memref<16x128xf32, #tpu.memory_space<vmem>>, vector<16x128xf32>
      tpu.vector_store %arg6[%c0_14, %c0_15], %15 {strides = array<i32>} : memref<16x128xf32, #tpu.memory_space<vmem>>, vector<16x128xf32>,
    } else {
    }
    return
  }
  func.func @transform_0(%arg0: i32, %arg1: i32, %arg2: i32) -> (i32, i32) {
    %c0_i32 = arith.constant 0 : i32
    return %arg0, %arg2 : i32, i32
  }
  func.func @transform_1(%arg0: i32, %arg1: i32, %arg2: i32) -> (i32, i32) {
    %c0_i32 = arith.constant 0 : i32
    return %arg2, %arg1 : i32, i32
  }
  func.func @transform_2(%arg0: i32, %arg1: i32, %arg2: i32) -> (i32, i32) {
    %c0_i32 = arith.constant 0 : i32
    %c0_i32_0 = arith.constant 0 : i32
    return %c0_i32, %arg1 : i32, i32
  }
  func.func @transform_3(%arg0: i32, %arg1: i32, %arg2: i32) -> (i32, i32) {
    %c0_i32 = arith.constant 0 : i32
    return %arg0, %arg1 : i32, i32
  }
}

</mosaic_0001>

<bundles_post_ra>
// kernel: _linear_forward_fmt.1
= control target key start
LH: loop header
LB: loop body
LE: loop exit
PB: predicated region body
PF: predicated region fallthrough
CT: control target
= control target key end

     0   :  { %8 = vsyncpa [#allocation4], 0  ;;  %s1122_s15 = smov [#allocation3]   ;;  %s1123_s17 = smov 64   ;;  %s1205_s0 = inlined_call_operand.vmem [shape: bf16[16,1024], index: 0, kind: input, shape index: {}]   ;;  %s1206_s1 = inlined_call_operand.hbm [shape: bf16[1024,128], index: 1, kind: input, shape index: {}]   ;;  %s1207_s2 = inlined_call_operand.vmem [shape: f32[1,128], index: 2, kind: input, shape index: {}]   ;;  %s1208_s3 = inlined_call_operand.vmem [shape: f32[16,128], index: 3, kind: output, shape index: {}]  }
   0x1   :  { %s15_s14 = sshll.u32 %s1206_s1, 4  ;;  %s17_s16 = sshll.u32 %s1122_s15, 4  ;;  %s16_s14 = int_to_ptr.hbm [resolvable:$true] %s15_s14  ;;  %s18_s16 = int_to_ptr.vmem [resolvable:$true] %s17_s16 }
   0x2   :  { %s1124_s18 = smov 4  }
   0x3   :  { %23 = dma.hbm_to_vmem [thread:$0]  %s16_s14, 8192, %s18_s16, [#allocation4], %s1123_s17, %s1123_s17, %s1124_s18  }
   0x4   :  { %1120 = dma.done.wait [#allocation4], 8192  }
   0x5   :  { %1121 = vsyncadd [#allocation4], 4294959104  ;;  %v1035_v0 = vld [vmem:[#allocation3 + $0x38] sm:$0xff]  ;;  %v1034_v4 = vld [vmem:[#allocation3 + $0x30] sm:$0xff] }
   0x6   :  { %v1043_v1 = vld [vmem:[#allocation3 + $0x78] sm:$0xff]  ;;  %598 = vmatpush.bf16.msra.mxu0 %v1035_v0  ;;  %v1042_v5 = vld [vmem:[#allocation3 + $0x70] sm:$0xff]  ;;  %v1033_v8 = vld [vmem:[#allocation3 + $0x28] sm:$0xff] }
   0x7   :  { %v1051_v2 = vld [vmem:[#allocation3 + $0xb8] sm:$0xff]  ;;  %612 = vmatpush.bf16.msra.mxu1 %v1043_v1  ;;  %v1050_v6 = vld [vmem:[#allocation3 + $0xb0] sm:$0xff]  ;;  %v1041_v9 = vld [vmem:[#allocation3 + $0x68] sm:$0xff] }
   0x8   :  { %v1059_v3 = vld [vmem:[#allocation3 + $0xf8] sm:$0xff]  ;;  %626 = vmatpush.bf16.msra.mxu2 %v1051_v2  ;;  %v1058_v7 = vld [vmem:[#allocation3 + $0xf0] sm:$0xff]  ;;  %v1049_v10 = vld [vmem:[#allocation3 + $0xa8] sm:$0xff] }
   0x9   :  { %640 = vmatpush.bf16.msra.mxu3 %v1059_v3  ;;  %v1057_v11 = vld [vmem:[#allocation3 + $0xe8] sm:$0xff]  ;;  %v1032_v12 = vld [vmem:[#allocation3 + $0x20] sm:$0xff]  ;;  %v1031_v16 = vld [vmem:[#allocation3 + $0x18] sm:$0xff] }
   0xa   :  { %599 = vmatpush.bf16.msra.mxu0 %v1034_v4  ;;  %v1040_v13 = vld [vmem:[#allocation3 + $0x60] sm:$0xff]  ;;  %v1039_v17 = vld [vmem:[#allocation3 + $0x58] sm:$0xff]  ;;  %v1030_v20 = vld [vmem:[#allocation3 + $0x10] sm:$0xff] }
   0xb   :  { %613 = vmatpush.bf16.msra.mxu1 %v1042_v5  ;;  %v1048_v14 = vld [vmem:[#allocation3 + $0xa0] sm:$0xff]  ;;  %v1047_v18 = vld [vmem:[#allocation3 + $0x98] sm:$0xff]  ;;  %v1038_v21 = vld [vmem:[#allocation3 + $0x50] sm:$0xff] }
   0xc   :  { %627 = vmatpush.bf16.msra.mxu2 %v1050_v6  ;;  %v1056_v15 = vld [vmem:[#allocation3 + $0xe0] sm:$0xff]  ;;  %v1055_v19 = vld [vmem:[#allocation3 + $0xd8] sm:$0xff]  ;;  %v1046_v22 = vld [vmem:[#allocation3 + $0x90] sm:$0xff] }
   0xd   :  { %641 = vmatpush.bf16.msra.mxu3 %v1058_v7  ;;  %v1054_v23 = vld [vmem:[#allocation3 + $0xd0] sm:$0xff]  ;;  %v1029_v24 = vld [vmem:[#allocation3 + $0x8] sm:$0xff]  ;;  %v1028_v28 = vld [vmem:[#allocation3] sm:$0xff] }
   0xe   :  { %600 = vmatpush.bf16.msra.mxu0 %v1033_v8  ;;  %v1037_v25 = vld [vmem:[#allocation3 + $0x48] sm:$0xff]  ;;  %v1036_v29 = vld [vmem:[#allocation3 + $0x40] sm:$0xff]  ;;  %v1067_v32 = vld [vmem:[#allocation3 + $0x138] sm:$0xff] }
   0xf   :  { %614 = vmatpush.bf16.msra.mxu1 %v1041_v9  ;;  %v1045_v26 = vld [vmem:[#allocation3 + $0x88] sm:$0xff]  ;;  %v1044_v30 = vld [vmem:[#allocation3 + $0x80] sm:$0xff]  ;;  %v1075_v33 = vld [vmem:[#allocation3 + $0x178] sm:$0xff] }
  0x10   :  { %628 = vmatpush.bf16.msra.mxu2 %v1049_v10  ;;  %v1053_v27 = vld [vmem:[#allocation3 + $0xc8] sm:$0xff]  ;;  %v1052_v31 = vld [vmem:[#allocation3 + $0xc0] sm:$0xff]  ;;  %v1083_v42 = vld [vmem:[#allocation3 + $0x1b8] sm:$0xff] }
  0x11   :  { %642 = vmatpush.bf16.msra.mxu3 %v1057_v11  ;;  %v742_v34 = vld [vmem:[%s1205_s0 + $0x8] sm:$0xf]  ;;  %v1021_v36 = vld [vmem:[%s1205_s0 + $0xc] sm:$0xf]  ;;  %v734_v38 = vld [vmem:[%s1205_s0] sm:$0xf] }
  0x12   :  { %601 = vmatpush.bf16.msra.mxu0 %v1032_v12  ;;  %v1025_v35 = vld [vmem:[%s1205_s0 + $0x24] sm:$0xf0]  ;;  %v744_v37 = vld [vmem:[%s1205_s0 + $0x28] sm:$0xf0]  ;;  %v1024_v39 = vld [vmem:[%s1205_s0 + $0x1c] sm:$0xf0] }
  0x13   :  { %615 = vmatpush.bf16.msra.mxu1 %v1040_v13  ;;  %v1020_v40 = vld [vmem:[%s1205_s0 + $0x4] sm:$0xf]  ;;  %v1091_v43 = vld [vmem:[#allocation3 + $0x1f8] sm:$0xff]  ;;  %v743_v44 = vor.u32 %v1025_v35, %v742_v34  ;;  %v747_v45 = vor.u32 %v1021_v36, %v744_v37  ;;  %v735_v46 = vor.u32 %v1024_v39, %v734_v38  ;;  %v1066_v48 = vld [vmem:[#allocation3 + $0x130] sm:$0xff] }
  0x14   :  { %629 = vmatpush.bf16.msra.mxu2 %v1048_v14  ;;  %v736_v41 = vld [vmem:[%s1205_s0 + $0x20] sm:$0xf0]  ;;  %v1074_v49 = vld [vmem:[#allocation3 + $0x170] sm:$0xff]  ;;  %v1065_v52 = vld [vmem:[#allocation3 + $0x128] sm:$0xff] }
  0x15   :  { %643 = vmatpush.bf16.msra.mxu3 %v1056_v15  ;;  %v739_v47 = vor.u32 %v1020_v40, %v736_v41  ;;  %v1082_v50 = vld [vmem:[#allocation3 + $0x1b0] sm:$0xff]  ;;  %v1073_v53 = vld [vmem:[#allocation3 + $0x168] sm:$0xff]  ;;  %v1064_v56 = vld [vmem:[#allocation3 + $0x120] sm:$0xff] }
  0x16   :  { %602 = vmatpush.bf16.msra.mxu0 %v1031_v16  ;;  %v1090_v51 = vld [vmem:[#allocation3 + $0x1f0] sm:$0xff]  ;;  %v1081_v54 = vld [vmem:[#allocation3 + $0x1a8] sm:$0xff]  ;;  %v1072_v57 = vld [vmem:[#allocation3 + $0x160] sm:$0xff] }
  0x17   :  { %616 = vmatpush.bf16.msra.mxu1 %v1039_v17  ;;  %v1089_v55 = vld [vmem:[#allocation3 + $0x1e8] sm:$0xff]  ;;  %v1080_v58 = vld [vmem:[#allocation3 + $0x1a0] sm:$0xff]  ;;  %v1063_v60 = vld [vmem:[#allocation3 + $0x118] sm:$0xff] }
  0x18   :  { %630 = vmatpush.bf16.msra.mxu2 %v1047_v18  ;;  %v1088_v59 = vld [vmem:[#allocation3 + $0x1e0] sm:$0xff]  ;;  %v1071_v61 = vld [vmem:[#allocation3 + $0x158] sm:$0xff]  ;;  %v1062_v0 = vld [vmem:[#allocation3 + $0x110] sm:$0xff] }
  0x19   :  { %644 = vmatpush.bf16.msra.mxu3 %v1055_v19  ;;  %v1079_v62 = vld [vmem:[#allocation3 + $0x198] sm:$0xff]  ;;  %v1070_v1 = vld [vmem:[#allocation3 + $0x150] sm:$0xff]  ;;  %v1061_v4 = vld [vmem:[#allocation3 + $0x108] sm:$0xff] }
  0x1a   :  { %603 = vmatpush.bf16.msra.mxu0 %v1030_v20  ;;  %v1087_v63 = vld [vmem:[#allocation3 + $0x1d8] sm:$0xff]  ;;  %v1078_v2 = vld [vmem:[#allocation3 + $0x190] sm:$0xff]  ;;  %v1069_v5 = vld [vmem:[#allocation3 + $0x148] sm:$0xff] }
  0x1b   :  { %617 = vmatpush.bf16.msra.mxu1 %v1038_v21  ;;  %v1086_v3 = vld [vmem:[#allocation3 + $0x1d0] sm:$0xff]  ;;  %v1077_v6 = vld [vmem:[#allocation3 + $0x188] sm:$0xff]  ;;  %v1060_v8 = vld [vmem:[#allocation3 + $0x100] sm:$0xff] }
  0x1c   :  { %631 = vmatpush.bf16.msra.mxu2 %v1046_v22  ;;  %v1085_v7 = vld [vmem:[#allocation3 + $0x1c8] sm:$0xff]  ;;  %v1068_v9 = vld [vmem:[#allocation3 + $0x140] sm:$0xff]  ;;  %v750_v12 = vld [vmem:[%s1205_s0 + $0x10] sm:$0xf] }
  0x1d   :  { %645 = vmatpush.bf16.msra.mxu3 %v1054_v23  ;;  %v1076_v10 = vld [vmem:[#allocation3 + $0x180] sm:$0xff]  ;;  %v1026_v13 = vld [vmem:[%s1205_s0 + $0x2c] sm:$0xf0]  ;;  %v1022_v14 = vld [vmem:[%s1205_s0 + $0x14] sm:$0xf] }
  0x1e   :  { %604 = vmatpush.bf16.msra.mxu0 %v1029_v24  ;;  %v1084_v11 = vld [vmem:[#allocation3 + $0x1c0] sm:$0xff]  ;;  %v752_v15 = vld [vmem:[%s1205_s0 + $0x30] sm:$0xf0]  ;;  %v758_v16 = vld [vmem:[%s1205_s0 + $0x18] sm:$0xf]  ;;  %v751_v20 = vor.u32 %v1026_v13, %v750_v12 }
  0x1f   :  { %618 = vmatpush.bf16.msra.mxu1 %v1037_v25  ;;  %v1027_v17 = vld [vmem:[%s1205_s0 + $0x34] sm:$0xf0]  ;;  %v1023_v18 = vld [vmem:[%s1205_s0 + $0x1c] sm:$0xf]  ;;  %v755_v21 = vor.u32 %v1022_v14, %v752_v15 }
  0x20   :  { %632 = vmatpush.bf16.msra.mxu2 %v1045_v26  ;;  %v760_v19 = vld [vmem:[%s1205_s0 + $0x38] sm:$0xf0]  ;;  %v759_v22 = vor.u32 %v1027_v17, %v758_v16 }
  0x21   :  { %646 = vmatpush.bf16.msra.mxu3 %v1053_v27  ;;  %v763_v23 = vor.u32 %v1023_v18, %v760_v19 }
  0x22   :  { %605 = vmatpush.bf16.msra.mxu0 %v1028_v28 }
  0x23   :  { %619 = vmatpush.bf16.msra.mxu1 %v1036_v29 }
  0x24   :  { %633 = vmatpush.bf16.msra.mxu2 %v1044_v30 }
  0x25   :  { %647 = vmatpush.bf16.msra.mxu3 %v1052_v31  ;;  %606 = vmatmul.bf16.vlgmr.msra.gmra.mxu0 %v735_v46 }
  0x26   :  { %654 = vmatpush.bf16.msrb.mxu0 %v1067_v32  ;;  %620 = vmatmul.bf16.vlgmr.msra.gmra.mxu1 %v739_v47 }
  0x27   :  { %668 = vmatpush.bf16.msrb.mxu1 %v1075_v33  ;;  %634 = vmatmul.bf16.vlgmr.msra.gmra.mxu2 %v743_v44 }
  0x28   :  { %682 = vmatpush.bf16.msrb.mxu2 %v1083_v42  ;;  %648 = vmatmul.bf16.vlgmr.msra.gmra.mxu3 %v747_v45  ;;  %v1095_v45 = vld [vmem:[%s1207_s2] ss:$0 sm:$0xff] }
  0x29   :  { %696 = vmatpush.bf16.msrb.mxu3 %v1091_v43 }
  0x2a   :  { %655 = vmatpush.bf16.msrb.mxu0 %v1066_v48 }
  0x2b   :  { %669 = vmatpush.bf16.msrb.mxu1 %v1074_v49 }
  0x2c   :  { %683 = vmatpush.bf16.msrb.mxu2 %v1082_v50 }
  0x2d   :  { %697 = vmatpush.bf16.msrb.mxu3 %v1090_v51 }
  0x2e   :  { %656 = vmatpush.bf16.msrb.mxu0 %v1065_v52 }
  0x2f   :  { %670 = vmatpush.bf16.msrb.mxu1 %v1073_v53 }
  0x30   :  { %684 = vmatpush.bf16.msrb.mxu2 %v1081_v54 }
  0x31   :  { %698 = vmatpush.bf16.msrb.mxu3 %v1089_v55 }
  0x32   :  { %657 = vmatpush.bf16.msrb.mxu0 %v1064_v56 }
  0x33   :  { %671 = vmatpush.bf16.msrb.mxu1 %v1072_v57 }
  0x34   :  { %685 = vmatpush.bf16.msrb.mxu2 %v1080_v58 }
  0x35   :  { %699 = vmatpush.bf16.msrb.mxu3 %v1088_v59 }
  0x36   :  { %658 = vmatpush.bf16.msrb.mxu0 %v1063_v60 }
  0x37   :  { %672 = vmatpush.bf16.msrb.mxu1 %v1071_v61 }
  0x38   :  { %686 = vmatpush.bf16.msrb.mxu2 %v1079_v62 }
  0x39   :  { %700 = vmatpush.bf16.msrb.mxu3 %v1087_v63 }
  0x3a   :  { %659 = vmatpush.bf16.msrb.mxu0 %v1062_v0 }
  0x3b   :  { %673 = vmatpush.bf16.msrb.mxu1 %v1070_v1 }
  0x3c   :  { %687 = vmatpush.bf16.msrb.mxu2 %v1078_v2 }
  0x3d   :  { %701 = vmatpush.bf16.msrb.mxu3 %v1086_v3 }
  0x3e   :  { %660 = vmatpush.bf16.msrb.mxu0 %v1061_v4 }
  0x3f   :  { %674 = vmatpush.bf16.msrb.mxu1 %v1069_v5 }
  0x40   :  { %688 = vmatpush.bf16.msrb.mxu2 %v1077_v6 }
  0x41   :  { %702 = vmatpush.bf16.msrb.mxu3 %v1085_v7 }
  0x42   :  { %661 = vmatpush.bf16.msrb.mxu0 %v1060_v8 }
  0x43   :  { %675 = vmatpush.bf16.msrb.mxu1 %v1068_v9 }
  0x44   :  { %689 = vmatpush.bf16.msrb.mxu2 %v1076_v10 }
  0x45   :  { %703 = vmatpush.bf16.msrb.mxu3 %v1084_v11  ;;  %662 = vmatmul.bf16.vlgmr.msrb.gmra.mxu0 %v751_v20 }
  0x46   :  { %676 = vmatmul.bf16.vlgmr.msrb.gmra.mxu1 %v755_v21 }
  0x47   :  { %690 = vmatmul.bf16.vlgmr.msrb.gmra.mxu2 %v759_v22 }
  0x48   :  { %704 = vmatmul.bf16.vlgmr.msrb.gmra.mxu3 %v763_v23 }
  0xa2   :  { %v607_v24 = vpop.f32.mrf.mxu0 }
  0xa3   :  { %v621_v25 = vpop.f32.mrf.mxu1 }
  0xa4   :  { %v622_v28 = vadd.f32 %v621_v25, %v607_v24 }
  0xaa   :  { %v635_v26 = vpop.f32.mrf.mxu2  ;;  %v609_v29 = vpop.f32.mrf.mxu0 }
  0xab   :  { %v649_v27 = vpop.f32.mrf.mxu3  ;;  %v623_v30 = vpop.f32.mrf.mxu1  ;;  %v636_v31 = vadd.f32 %v635_v26, %v622_v28 }
  0xac   :  { %v624_v35 = vadd.f32 %v623_v30, %v609_v29 }
  0xad   :  { %v650_v34 = vadd.f32 %v649_v27, %v636_v31 }
  0xb2   :  { %v637_v32 = vpop.f32.mrf.mxu2 }
  0xb3   :  { %v651_v33 = vpop.f32.mrf.mxu3  ;;  %v638_v39 = vadd.f32 %v637_v32, %v624_v35 }
  0xb5   :  { %v652_v43 = vadd.f32 %v651_v33, %v638_v39 }
  0xc2   :  { %v663_v36 = vpop.f32.mrf.mxu0 }
  0xc3   :  { %v664_v37 = vadd.f32 %v663_v36, %v650_v34  ;;  %v677_v38 = vpop.f32.mrf.mxu1 }
  0xc5   :  { %v678_v40 = vadd.f32 %v677_v38, %v664_v37 }
  0xca   :  { %v691_v41 = vpop.f32.mrf.mxu2  ;;  %v665_v46 = vpop.f32.mrf.mxu0 }
  0xcb   :  { %v705_v42 = vpop.f32.mrf.mxu3  ;;  %v692_v44 = vadd.f32 %v691_v41, %v678_v40  ;;  %v666_v48 = vadd.f32 %v665_v46, %v652_v43  ;;  %v679_v50 = vpop.f32.mrf.mxu1 }
  0xcd   :  { %v706_v47 = vadd.f32 %v705_v42, %v692_v44  ;;  %v680_v51 = vadd.f32 %v679_v50, %v666_v48 }
  0xcf   :  { %v723_v49 = vadd.f32 %v1095_v45, %v706_v47 }
  0xd1   :  { %725 = vst [vmem:[%s1208_s3] sm:$0xff] %v723_v49 }
  0xd2   :  { %v693_v52 = vpop.f32.mrf.mxu2 }
  0xd3   :  { %v694_v53 = vadd.f32 %v693_v52, %v680_v51  ;;  %v707_v54 = vpop.f32.mrf.mxu3 }
  0xd5   :  { %v708_v55 = vadd.f32 %v707_v54, %v694_v53 }
  0xd7   :  { %v724_v56 = vadd.f32 %v1095_v45, %v708_v55 }
  0xd9   :  { %726 = vst [vmem:[%s1208_s3 + $0x8] sm:$0xff] %v724_v56 }
  0xda   :  { %731 = vsyncpa [#allocation4], 1 }

</bundles_post_ra>
